<compile_context>
chip_gen: v5e
topology: v5e:2x2
jax: 0.10.0
libtpu: 0.0.40
codegen_flags: <defaults>
</compile_context>

<pallas_src>
import functools
from math import sqrt

import jax
import jax.numpy as jnp
from jax.experimental import pallas as pl
from jax.experimental.pallas import tpu as pltpu

KH = KW = 3  # kernel_size=3, stride=1, padding='same'


def _fused_conv_lif_kernel(x_ref, wb_ref, b_ref, o_ref, *, T, H,
                           threshold, scaling, mult_factor):
    # x_ref : (1, KH, T*H, (W+2)*C)  kh-shifted, row-collapsed padded input
    # wb_ref: (KH, (W+2)*C, W*O)     banded (shift-embedded) weights
    # b_ref : (1, W*O)               bias tiled over W
    # o_ref : (1, T*H, W*O)          spikes (lane-dense)
    TH, WO = o_ref.shape[1], o_ref.shape[2]

    # ---- conv: 3 lane-dense MXU matmuls over all T time steps at once ----
    acc = jnp.zeros((TH, WO), jnp.float32)
    for kh in range(KH):
        acc = acc + jnp.dot(x_ref[0, kh], wb_ref[kh],
                            preferred_element_type=jnp.float32)
    acc = acc + b_ref[...]  # (1, W*O) broadcast

    # ---- LIF scan over time (rows t*H:(t+1)*H of acc are time step t) ----
    mem = jnp.zeros((H, WO), jnp.float32)
    spikes = []
    for t in range(T):  # T small & static -> unrolled
        mem = mem * mult_factor + acc[t * H:(t + 1) * H, :] * scaling
        spk = (mem > threshold).astype(jnp.float32)
        spikes.append(spk)
        mem = mem - spk * threshold

    # single dense store of the whole (T*H, W*O) spike block
    o_ref[...] = jnp.concatenate(spikes, axis=0)[None].astype(o_ref.dtype)


def spiking_conv2d(x, weight, bias, *, threshold=0.5, scaling=1.0 / 4,
                   mult_factor=3.5 / 4):
    """x: (B, C, H, W, T) f32; weight: torch layout (O, C, KH, KW); bias: (O,).

    Returns spikes of shape (B, O, H, W, T) (PyTorch module output layout).
    """
    B, C, H, W, T = x.shape
    O = weight.shape[0]
    WP = W + 2            # padded width ('same' padding of 1)
    WPC = WP * C          # conv contraction size per kh (= 72 here)
    WO = W * O            # lane-dense output width (= 128 here)

    # ---- banded weights: wb[kh, (w+kw)*C + c, w*O + o] = weight[o,c,kh,kw] ----
    w_t = jnp.transpose(weight, (2, 3, 1, 0)).astype(jnp.float32)  # (KH,KW,C,O)
    wb = jnp.zeros((KH, WP, C, W, O), jnp.float32)
    wcols = jnp.arange(W)
    for kh in range(KH):
        for kw in range(KW):
            wb = wb.at[kh, wcols + kw, :, wcols, :].set(w_t[kh, kw])
    wb = wb.reshape(KH, WPC, WO)

    # bias tiled over W so it broadcasts onto the (.., W*O) lane layout
    bias_row = jnp.tile(bias.astype(jnp.float32), W).reshape(1, WO)

    # ---- input: (B,C,H,W,T) -> (B,T,H+2,(W+2)*C), then kh-shifted copies ----
    xn = jnp.transpose(x, (0, 4, 2, 3, 1))                       # (B,T,H,W,C)
    xp = jnp.pad(xn, ((0, 0), (0, 0), (1, 1), (1, 1), (0, 0)))    # pad H,W
    xp = xp.reshape(B, T, H + 2, WPC)
    # pre-shift along H per kh so the kernel only does clean 2-D matmuls
    x_sh = jnp.stack(
        [xp[:, :, kh:kh + H, :].reshape(B, T * H, WPC) for kh in range(KH)],
        axis=1)                                                   # (B,KH,T*H,WPC)

    out = pl.pallas_call(
        functools.partial(_fused_conv_lif_kernel, T=T, H=H,
                          threshold=threshold, scaling=scaling,
                          mult_factor=mult_factor),
        out_shape=jax.ShapeDtypeStruct((B, T * H, WO), jnp.float32),
        grid=(B,),
        in_specs=[
            pl.BlockSpec((1, KH, T * H, WPC), lambda b: (b, 0, 0, 0)),
            pl.BlockSpec((KH, WPC, WO), lambda b: (0, 0, 0)),
            pl.BlockSpec((1, WO), lambda b: (0, 0)),
        ],
        out_specs=pl.BlockSpec((1, T * H, WO), lambda b: (b, 0, 0)),
        compiler_params=pltpu.CompilerParams(
            dimension_semantics=("parallel",)),  # 2 TCs on v7x, no-op on v5e/v6e
    )(x_sh, wb, bias_row)

    # (B, T*H, W*O) -> (B, T, H, W, O) -> (B, O, H, W, T)
    return jnp.transpose(out.reshape(B, T, H, W, O), (0, 4, 2, 3, 1))


def _reference(x, weight, bias, *, threshold, scaling, mult_factor):
    """Pure-JAX reference (lax.conv + python LIF scan) for a sanity check."""
    B, C, H, W, T = x.shape
    O = weight.shape[0]
    xn = jnp.transpose(x, (0, 4, 2, 3, 1)).reshape(B * T, H, W, C)
    w_hwio = jnp.transpose(weight, (2, 3, 1, 0))
    y = jax.lax.conv_general_dilated(
        xn, w_hwio, window_strides=(1, 1), padding="SAME",
        dimension_numbers=("NHWC", "HWIO", "NHWC")) + bias
    y = y.reshape(B, T, H, W, O)
    mem = jnp.zeros((B, H, W, O), jnp.float32)
    spikes = []
    for t in range(T):
        mem = mem * mult_factor + y[:, t] * scaling
        s = (mem > threshold).astype(jnp.float32)
        spikes.append(s)
        mem = mem - s * threshold
    return jnp.transpose(jnp.stack(spikes, axis=0), (1, 4, 2, 3, 0))


if __name__ == "__main__":
    B, C, H, W, T = 2, 4, 16, 16, 8
    O = 8

    key = jax.random.PRNGKey(0)
    kx, kwt, kb = jax.random.split(key, 3)
    x = jax.random.normal(kx, (B, C, H, W, T), jnp.float32)

    # torch-native weight layout (O, C, KH, KW), default Conv2d init bounds
    fan_in = C * KH * KW
    bound = 1.0 / sqrt(fan_in)
    weight = jax.random.uniform(kwt, (O, C, KH, KW), jnp.float32, -bound, bound)
    bias = jax.random.uniform(kb, (O,), jnp.float32, -bound, bound)

    out = spiking_conv2d(x, weight, bias,
                         threshold=0.5, scaling=1.0 / 4, mult_factor=3.5 / 4)
    out = jax.block_until_ready(out)

    assert out.shape == (B, O, H, W, T), out.shape
    assert bool(jnp.all((out == 0.0) | (out == 1.0)))  # spikes are binary

    # correctness vs pure-JAX reference (lenient: tolerates rare
    # threshold-boundary flips from differing float summation order)
    ref = _reference(x, weight, bias,
                     threshold=0.5, scaling=1.0 / 4, mult_factor=3.5 / 4)
    mismatch = float(jnp.mean(jnp.abs(out - ref) > 0.5))
    assert mismatch < 0.01, f"spike mismatch fraction {mismatch}"

    print("KERNEL_OK")
</pallas_src>

<mosaic_0001>
module attributes {stable_mosaic.version = 11 : i64} {
  func.func @_fused_conv_lif_kernel(%arg0: i32, %arg1: memref<1x3x128x72xf32, #tpu.memory_space<vmem>>, %arg2: memref<3x72x128xf32, #tpu.memory_space<vmem>>, %arg3: memref<1x128xf32, #tpu.memory_space<vmem>>, %arg4: memref<1x128x128xf32, #tpu.memory_space<vmem>>) attributes {dimension_semantics = [#tpu.dimension_semantics<parallel>], iteration_bounds = array<i64: 2>, scalar_prefetch = 0 : i64, scratch_operands = 0 : i64, tpu.core_type = #tpu.core_type<tc>, window_params = [{transform_indices = @transform_0, window_bounds = array<i64: 1, 3, 128, 72>}, {pipeline_mode = #tpu.pipeline_mode<synchronous>, transform_indices = @transform_1, window_bounds = array<i64: 3, 72, 128>}, {pipeline_mode = #tpu.pipeline_mode<synchronous>, transform_indices = @transform_2, window_bounds = array<i64: 1, 128>}, {transform_indices = @transform_3, window_bounds = array<i64: 1, 128, 128>}]} {
    %cst = arith.constant 0.000000e+00 : f32
    %0 = vector.broadcast %cst : f32 to vector<128x128xf32>
    %c0 = arith.constant 0 : index
    %c0_0 = arith.constant 0 : index
    %c0_1 = arith.constant 0 : index
    %c0_2 = arith.constant 0 : index
    %1 = vector.load %arg1[%c0, %c0_0, %c0_1, %c0_2] : memref<1x3x128x72xf32, #tpu.memory_space<vmem>>, vector<1x1x128x72xf32>
    %2 = vector.shape_cast %1 : vector<1x1x128x72xf32> to vector<128x72xf32>
    %c0_3 = arith.constant 0 : index
    %c0_4 = arith.constant 0 : index
    %c0_5 = arith.constant 0 : index
    %3 = vector.load %arg2[%c0_3, %c0_4, %c0_5] : memref<3x72x128xf32, #tpu.memory_space<vmem>>, vector<1x72x128xf32>
    %4 = vector.shape_cast %3 : vector<1x72x128xf32> to vector<72x128xf32>
    %cst_6 = arith.constant dense<0.000000e+00> : vector<128x128xf32>
    %5 = tpu.matmul %2, %4, %cst_6 {dimension_numbers = #tpu.dot_dimension_numbers<[1], [0], [0], [1], [0, 0, 1, 1], [], []>} : vector<128x72xf32>, vector<72x128xf32>, vector<128x128xf32> -> vector<128x128xf32>
    %6 = arith.addf %0, %5 : vector<128x128xf32>
    %c0_7 = arith.constant 0 : index
    %c1 = arith.constant 1 : index
    %c0_8 = arith.constant 0 : index
    %c0_9 = arith.constant 0 : index
    %7 = vector.load %arg1[%c0_7, %c1, %c0_8, %c0_9] : memref<1x3x128x72xf32, #tpu.memory_space<vmem>>, vector<1x1x128x72xf32>
    %8 = vector.shape_cast %7 : vector<1x1x128x72xf32> to vector<128x72xf32>
    %c1_10 = arith.constant 1 : index
    %c0_11 = arith.constant 0 : index
    %c0_12 = arith.constant 0 : index
    %9 = vector.load %arg2[%c1_10, %c0_11, %c0_12] : memref<3x72x128xf32, #tpu.memory_space<vmem>>, vector<1x72x128xf32>
    %10 = vector.shape_cast %9 : vector<1x72x128xf32> to vector<72x128xf32>
    %cst_13 = arith.constant dense<0.000000e+00> : vector<128x128xf32>
    %11 = tpu.matmul %8, %10, %cst_13 {dimension_numbers = #tpu.dot_dimension_numbers<[1], [0], [0], [1], [0, 0, 1, 1], [], []>} : vector<128x72xf32>, vector<72x128xf32>, vector<128x128xf32> -> vector<128x128xf32>
    %12 = arith.addf %6, %11 : vector<128x128xf32>
    %c0_14 = arith.constant 0 : index
    %c2 = arith.constant 2 : index
    %c0_15 = arith.constant 0 : index
    %c0_16 = arith.constant 0 : index
    %13 = vector.load %arg1[%c0_14, %c2, %c0_15, %c0_16] : memref<1x3x128x72xf32, #tpu.memory_space<vmem>>, vector<1x1x128x72xf32>
    %14 = vector.shape_cast %13 : vector<1x1x128x72xf32> to vector<128x72xf32>
    %c2_17 = arith.constant 2 : index
    %c0_18 = arith.constant 0 : index
    %c0_19 = arith.constant 0 : index
    %15 = vector.load %arg2[%c2_17, %c0_18, %c0_19] : memref<3x72x128xf32, #tpu.memory_space<vmem>>, vector<1x72x128xf32>
    %16 = vector.shape_cast %15 : vector<1x72x128xf32> to vector<72x128xf32>
    %cst_20 = arith.constant dense<0.000000e+00> : vector<128x128xf32>
    %17 = tpu.matmul %14, %16, %cst_20 {dimension_numbers = #tpu.dot_dimension_numbers<[1], [0], [0], [1], [0, 0, 1, 1], [], []>} : vector<128x72xf32>, vector<72x128xf32>, vector<128x128xf32> -> vector<128x128xf32>
    %18 = arith.addf %12, %17 : vector<128x128xf32>
    %c0_21 = arith.constant 0 : index
    %c0_22 = arith.constant 0 : index
    %19 = vector.load %arg3[%c0_21, %c0_22] : memref<1x128xf32, #tpu.memory_space<vmem>>, vector<1x128xf32>
    %20 = vector.broadcast %19 : vector<1x128xf32> to vector<128x128xf32>
    %21 = arith.addf %18, %20 : vector<128x128xf32>
    %cst_23 = arith.constant 0.000000e+00 : f32
    %22 = vector.broadcast %cst_23 : f32 to vector<16x128xf32>
    %cst_24 = arith.constant 8.750000e-01 : f32
    %23 = vector.broadcast %cst_24 : f32 to vector<16x128xf32>
    %24 = arith.mulf %22, %23 : vector<16x128xf32>
    %25 = vector.extract_strided_slice %21 {offsets = [0, 0], sizes = [16, 128], strides = [1, 1]} : vector<128x128xf32> to vector<16x128xf32>
    %cst_25 = arith.constant 2.500000e-01 : f32
    %26 = vector.broadcast %cst_25 : f32 to vector<16x128xf32>
    %27 = arith.mulf %25, %26 : vector<16x128xf32>
    %28 = arith.addf %24, %27 : vector<16x128xf32>
    %cst_26 = arith.constant 5.000000e-01 : f32
    %29 = vector.broadcast %cst_26 : f32 to vector<16x128xf32>
    %30 = arith.cmpf ogt, %28, %29 : vector<16x128xf32>
    %31 = arith.extui %30 : vector<16x128xi1> to vector<16x128xi32>
    %32 = arith.sitofp %31 : vector<16x128xi32> to vector<16x128xf32>
    %cst_27 = arith.constant 5.000000e-01 : f32
    %33 = vector.broadcast %cst_27 : f32 to vector<16x128xf32>
    %34 = arith.mulf %32, %33 : vector<16x128xf32>
    %35 = arith.subf %28, %34 : vector<16x128xf32>
    %cst_28 = arith.constant 8.750000e-01 : f32
    %36 = vector.broadcast %cst_28 : f32 to vector<16x128xf32>
    %37 = arith.mulf %35, %36 : vector<16x128xf32>
    %38 = vector.extract_strided_slice %21 {offsets = [16, 0], sizes = [16, 128], strides = [1, 1]} : vector<128x128xf32> to vector<16x128xf32>
    %cst_29 = arith.constant 2.500000e-01 : f32
    %39 = vector.broadcast %cst_29 : f32 to vector<16x128xf32>
    %40 = arith.mulf %38, %39 : vector<16x128xf32>
    %41 = arith.addf %37, %40 : vector<16x128xf32>
    %cst_30 = arith.constant 5.000000e-01 : f32
    %42 = vector.broadcast %cst_30 : f32 to vector<16x128xf32>
    %43 = arith.cmpf ogt, %41, %42 : vector<16x128xf32>
    %44 = arith.extui %43 : vector<16x128xi1> to vector<16x128xi32>
    %45 = arith.sitofp %44 : vector<16x128xi32> to vector<16x128xf32>
    %cst_31 = arith.constant 5.000000e-01 : f32
    %46 = vector.broadcast %cst_31 : f32 to vector<16x128xf32>
    %47 = arith.mulf %45, %46 : vector<16x128xf32>
    %48 = arith.subf %41, %47 : vector<16x128xf32>
    %cst_32 = arith.constant 8.750000e-01 : f32
    %49 = vector.broadcast %cst_32 : f32 to vector<16x128xf32>
    %50 = arith.mulf %48, %49 : vector<16x128xf32>
    %51 = vector.extract_strided_slice %21 {offsets = [32, 0], sizes = [16, 128], strides = [1, 1]} : vector<128x128xf32> to vector<16x128xf32>
    %cst_33 = arith.constant 2.500000e-01 : f32
    %52 = vector.broadcast %cst_33 : f32 to vector<16x128xf32>
    %53 = arith.mulf %51, %52 : vector<16x128xf32>
    %54 = arith.addf %50, %53 : vector<16x128xf32>
    %cst_34 = arith.constant 5.000000e-01 : f32
    %55 = vector.broadcast %cst_34 : f32 to vector<16x128xf32>
    %56 = arith.cmpf ogt, %54, %55 : vector<16x128xf32>
    %57 = arith.extui %56 : vector<16x128xi1> to vector<16x128xi32>
    %58 = arith.sitofp %57 : vector<16x128xi32> to vector<16x128xf32>
    %cst_35 = arith.constant 5.000000e-01 : f32
    %59 = vector.broadcast %cst_35 : f32 to vector<16x128xf32>
    %60 = arith.mulf %58, %59 : vector<16x128xf32>
    %61 = arith.subf %54, %60 : vector<16x128xf32>
    %cst_36 = arith.constant 8.750000e-01 : f32
    %62 = vector.broadcast %cst_36 : f32 to vector<16x128xf32>
    %63 = arith.mulf %61, %62 : vector<16x128xf32>
    %64 = vector.extract_strided_slice %21 {offsets = [48, 0], sizes = [16, 128], strides = [1, 1]} : vector<128x128xf32> to vector<16x128xf32>
    %cst_37 = arith.constant 2.500000e-01 : f32
    %65 = vector.broadcast %cst_37 : f32 to vector<16x128xf32>
    %66 = arith.mulf %64, %65 : vector<16x128xf32>
    %67 = arith.addf %63, %66 : vector<16x128xf32>
    %cst_38 = arith.constant 5.000000e-01 : f32
    %68 = vector.broadcast %cst_38 : f32 to vector<16x128xf32>
    %69 = arith.cmpf ogt, %67, %68 : vector<16x128xf32>
    %70 = arith.extui %69 : vector<16x128xi1> to vector<16x128xi32>
    %71 = arith.sitofp %70 : vector<16x128xi32> to vector<16x128xf32>
    %cst_39 = arith.constant 5.000000e-01 : f32
    %72 = vector.broadcast %cst_39 : f32 to vector<16x128xf32>
    %73 = arith.mulf %71, %72 : vector<16x128xf32>
    %74 = arith.subf %67, %73 : vector<16x128xf32>
    %cst_40 = arith.constant 8.750000e-01 : f32
    %75 = vector.broadcast %cst_40 : f32 to vector<16x128xf32>
    %76 = arith.mulf %74, %75 : vector<16x128xf32>
    %77 = vector.extract_strided_slice %21 {offsets = [64, 0], sizes = [16, 128], strides = [1, 1]} : vector<128x128xf32> to vector<16x128xf32>
    %cst_41 = arith.constant 2.500000e-01 : f32
    %78 = vector.broadcast %cst_41 : f32 to vector<16x128xf32>
    %79 = arith.mulf %77, %78 : vector<16x128xf32>
    %80 = arith.addf %76, %79 : vector<16x128xf32>
    %cst_42 = arith.constant 5.000000e-01 : f32
    %81 = vector.broadcast %cst_42 : f32 to vector<16x128xf32>
    %82 = arith.cmpf ogt, %80, %81 : vector<16x128xf32>
    %83 = arith.extui %82 : vector<16x128xi1> to vector<16x128xi32>
    %84 = arith.sitofp %83 : vector<16x128xi32> to vector<16x128xf32>
    %cst_43 = arith.constant 5.000000e-01 : f32
    %85 = vector.broadcast %cst_43 : f32 to vector<16x128xf32>
    %86 = arith.mulf %84, %85 : vector<16x128xf32>
    %87 = arith.subf %80, %86 : vector<16x128xf32>
    %cst_44 = arith.constant 8.750000e-01 : f32
    %88 = vector.broadcast %cst_44 : f32 to vector<16x128xf32>
    %89 = arith.mulf %87, %88 : vector<16x128xf32>
    %90 = vector.extract_strided_slice %21 {offsets = [80, 0], sizes = [16, 128], strides = [1, 1]} : vector<128x128xf32> to vector<16x128xf32>
    %cst_45 = arith.constant 2.500000e-01 : f32
    %91 = vector.broadcast %cst_45 : f32 to vector<16x128xf32>
    %92 = arith.mulf %90, %91 : vector<16x128xf32>
    %93 = arith.addf %89, %92 : vector<16x128xf32>
    %cst_46 = arith.constant 5.000000e-01 : f32
    %94 = vector.broadcast %cst_46 : f32 to vector<16x128xf32>
    %95 = arith.cmpf ogt, %93, %94 : vector<16x128xf32>
    %96 = arith.extui %95 : vector<16x128xi1> to vector<16x128xi32>
    %97 = arith.sitofp %96 : vector<16x128xi32> to vector<16x128xf32>
    %cst_47 = arith.constant 5.000000e-01 : f32
    %98 = vector.broadcast %cst_47 : f32 to vector<16x128xf32>
    %99 = arith.mulf %97, %98 : vector<16x128xf32>
    %100 = arith.subf %93, %99 : vector<16x128xf32>
    %cst_48 = arith.constant 8.750000e-01 : f32
    %101 = vector.broadcast %cst_48 : f32 to vector<16x128xf32>
    %102 = arith.mulf %100, %101 : vector<16x128xf32>
    %103 = vector.extract_strided_slice %21 {offsets = [96, 0], sizes = [16, 128], strides = [1, 1]} : vector<128x128xf32> to vector<16x128xf32>
    %cst_49 = arith.constant 2.500000e-01 : f32
    %104 = vector.broadcast %cst_49 : f32 to vector<16x128xf32>
    %105 = arith.mulf %103, %104 : vector<16x128xf32>
    %106 = arith.addf %102, %105 : vector<16x128xf32>
    %cst_50 = arith.constant 5.000000e-01 : f32
    %107 = vector.broadcast %cst_50 : f32 to vector<16x128xf32>
    %108 = arith.cmpf ogt, %106, %107 : vector<16x128xf32>
    %109 = arith.extui %108 : vector<16x128xi1> to vector<16x128xi32>
    %110 = arith.sitofp %109 : vector<16x128xi32> to vector<16x128xf32>
    %cst_51 = arith.constant 5.000000e-01 : f32
    %111 = vector.broadcast %cst_51 : f32 to vector<16x128xf32>
    %112 = arith.mulf %110, %111 : vector<16x128xf32>
    %113 = arith.subf %106, %112 : vector<16x128xf32>
    %cst_52 = arith.constant 8.750000e-01 : f32
    %114 = vector.broadcast %cst_52 : f32 to vector<16x128xf32>
    %115 = arith.mulf %113, %114 : vector<16x128xf32>
    %116 = vector.extract_strided_slice %21 {offsets = [112, 0], sizes = [16, 128], strides = [1, 1]} : vector<128x128xf32> to vector<16x128xf32>
    %cst_53 = arith.constant 2.500000e-01 : f32
    %117 = vector.broadcast %cst_53 : f32 to vector<16x128xf32>
    %118 = arith.mulf %116, %117 : vector<16x128xf32>
    %119 = arith.addf %115, %118 : vector<16x128xf32>
    %cst_54 = arith.constant 5.000000e-01 : f32
    %120 = vector.broadcast %cst_54 : f32 to vector<16x128xf32>
    %121 = arith.cmpf ogt, %119, %120 : vector<16x128xf32>
    %122 = arith.extui %121 : vector<16x128xi1> to vector<16x128xi32>
    %123 = arith.sitofp %122 : vector<16x128xi32> to vector<16x128xf32>
    %124 = tpu.concatenate %32, %45, %58, %71, %84, %97, %110, %123 in 0 : vector<16x128xf32>, vector<16x128xf32>, vector<16x128xf32>, vector<16x128xf32>, vector<16x128xf32>, vector<16x128xf32>, vector<16x128xf32>, vector<16x128xf32> -> vector<128x128xf32>
    %125 = vector.shape_cast %124 : vector<128x128xf32> to vector<1x128x128xf32>
    %c0_55 = arith.constant 0 : index
    %c0_56 = arith.constant 0 : index
    %c0_57 = arith.constant 0 : index
    %126 = vector.load %arg4[%c0_55, %c0_56, %c0_57] : memref<1x128x128xf32, #tpu.memory_space<vmem>>, vector<1x128x128xf32>
    tpu.vector_store %arg4[%c0_55, %c0_56, %c0_57], %125 {strides = array<i32>} : memref<1x128x128xf32, #tpu.memory_space<vmem>>, vector<1x128x128xf32>,
    return
  }
  func.func @transform_0(%arg0: i32) -> (i32, i32, i32, i32) {
    %c0_i32 = arith.constant 0 : i32
    %c0_i32_0 = arith.constant 0 : i32
    %c0_i32_1 = arith.constant 0 : i32
    %c0_i32_2 = arith.constant 0 : i32
    return %arg0, %c0_i32, %c0_i32_0, %c0_i32_1 : i32, i32, i32, i32
  }
  func.func @transform_1(%arg0: i32) -> (i32, i32, i32) {
    %c0_i32 = arith.constant 0 : i32
    %c0_i32_0 = arith.constant 0 : i32
    %c0_i32_1 = arith.constant 0 : i32
    %c0_i32_2 = arith.constant 0 : i32
    return %c0_i32, %c0_i32_0, %c0_i32_1 : i32, i32, i32
  }
  func.func @transform_2(%arg0: i32) -> (i32, i32) {
    %c0_i32 = arith.constant 0 : i32
    %c0_i32_0 = arith.constant 0 : i32
    %c0_i32_1 = arith.constant 0 : i32
    return %c0_i32, %c0_i32_0 : i32, i32
  }
  func.func @transform_3(%arg0: i32) -> (i32, i32, i32) {
    %c0_i32 = arith.constant 0 : i32
    %c0_i32_0 = arith.constant 0 : i32
    %c0_i32_1 = arith.constant 0 : i32
    return %arg0, %c0_i32, %c0_i32_0 : i32, i32, i32
  }
}

</mosaic_0001>

<bundles_post_ra>
// kernel: tpu_custom_call.1
= control target key start
LH: loop header
LB: loop body
LE: loop exit
PB: predicated region body
PF: predicated region fallthrough
CT: control target
= control target key end

     0   :  { %8 = vsyncpa [#allocation3], 0  ;;  %s1525_s0 = inlined_call_operand.vmem [shape: f32[2,3,128,72], index: 0, kind: input, shape index: {}]   ;;  %s1526_s1 = inlined_call_operand.vmem [shape: f32[3,72,128], index: 1, kind: input, shape index: {}]   ;;  %s1527_s2 = inlined_call_operand.vmem [shape: f32[1,128], index: 2, kind: input, shape index: {}]   ;;  %s1528_s3 = inlined_call_operand.hbm [shape: f32[2,128,128], index: 3, kind: output, shape index: {}]  }
   0x1   :  { %10 = vsyncpa [#allocation3 + $0x1], 0  ;;  %s1124_s12 = smov 0   ;;  %s1126_s13 = smov 0  }
   0x2   :  { %s1128_s14 = smov 0   ;;  %s1130_s15 = smov 0  }
   0x3 LB: > { %s1145_s16 = sadd.s32 4294967295, %s1099_s15   ;;  %s840_s17 = sadd.s32 4294967294, %s1099_s15   ;;  %s1099_s15 = sphi %s1130_s15, %s1534_s15   ;;  %s1095_s14 = sphi %s1128_s14, %s1533_s14   ;;  %s1091_s13 = sphi %s1126_s13, %s1532_s13   ;;  %s1087_s12 = sphi %s1124_s12, %s1531_s12  }
   0x4   : > { %s1149_s18 = sadd.s32 1, %s1099_s15   ;;  %s91_s19 = sadd.s32 1, %s1095_s14 }
   0x5   : > { %s88_s20 = ssub.s32 %s1099_s15, %s1149_s18  ;;  %p101_p0 = scmp.ne.s32.totalorder %s1095_s14, %s1091_s13 }
   0x6   : > { %p89_p1 = scmp.eq.s32.totalorder %s88_s20, 0  ;;  %p102_p2 = scmp.eq.s32.totalorder %s1145_s16, 1 }
   0x7   : > { %p107_p3 = scmp.ne.s32.totalorder %s1091_s13, %s1087_s12  ;;  %p108_p4 = scmp.eq.s32.totalorder %s840_s17, 1 }
   0x8   : > { %s1160_s21 = scalar_select %p89_p1, %s1095_s14, %s91_s19  }
   0x9   : > { %p1162_p5 = por %p102_p2, %p101_p0  ;;  %p1166_p6 = por %p108_p4, %p107_p3 }
   0xa   : > { %p843_p7 = scmp.ge.s32.totalorder %s1099_s15, 1  ;;  %p140_p8 = scmp.lt.s32.totalorder %s1099_s15, 3 }
   0xc   : > { %p141_p9 = pnand %p843_p7, %p140_p8 }
   0xd   : > { %p164_p10 = scmp.lt.s32.totalorder (!%p141_p9), %s1145_s16, 1  ;;  %s161_s4 = sand.u32 (!%p141_p9), 1, %s1091_s13  }
   0xe   : > { %144 = sbr.rel (%p141_p9) target bundleno = 291 (0x123), region = 32  ;;  %s844_s5 = sshll.u32 (!%p141_p9), %s161_s4, 7 }
   0xf   : > { %s1423_s6 = scalar_lea.vmem (!%p141_p9), [#allocation2], %s844_s5  ;;  %s965_s7 = sshll.u32 (!%p141_p9), %s1145_s16, 7 }
  0x10   : > { %s774_s10 = scalar_lea.hbm (!%p141_p9), %s1528_s3, %s965_s7  ;;  %s763_s17 = scalar_lea.sflag (!%p141_p9), [#allocation3], %s161_s4 }
  0x13   : > { %v870_v0 = vld [vmem:[%s1526_s1 + $0x88] sm:$0xff]  ;;  %v1178_v1 = vld [vmem:[%s1526_s1 + $0xd0] sm:$0xff]  ;;  %v869_v2 = vld [vmem:[%s1526_s1 + $0x80] sm:$0xff]  ;;  %s1227_s28 = scalar_select %p164_p10, %s1145_s16, 1  ;;  %vm221_vm0 = vcmask 588800  }
  0x14   : > { %966 = vmatpush.msra.mxu3 %v870_v0  ;;  %530 = vmatpush.msra.mxu2 %v1178_v1  ;;  %v1188_v3 = vld [vmem:[%s1526_s1 + $0xc8] sm:$0xff]  ;;  %v1193_v4 = vld [vmem:[%s1526_s1 + $0x40] sm:$0xff]  ;;  %v868_v5 = vld [vmem:[%s1526_s1 + $0x78] sm:$0xff]  ;;  %s775_s16 = sshll.u32 %s1423_s6, 4  ;;  %s776_s16 = int_to_ptr.vmem [resolvable:$true] %s775_s16 }
  0x15   : > { %277 = vmatpush.msra.mxu0 %v870_v0  ;;  %390 = vmatpush.msra.mxu1 %v1193_v4  ;;  %v1202_v6 = vld [vmem:[%s1526_s1 + $0xc0] sm:$0xff]  ;;  %v1207_v7 = vld [vmem:[%s1526_s1 + $0x38] sm:$0xff]  ;;  %v1213_v8 = vld [vmem:[%s1526_s1 + $0x30] sm:$0xff]  ;;  %s993_s20 = smul.u32 384, %s1227_s28 }
  0x16   : > { %967 = vmatpush.msra.mxu3 %v869_v2  ;;  %531 = vmatpush.msra.mxu2 %v1188_v3  ;;  %v867_v9 = vld [vmem:[%s1526_s1 + $0x70] sm:$0xff]  ;;  %v1222_v10 = vld [vmem:[%s1526_s1 + $0xb8] sm:$0xff]  ;;  %v190_v11 = vld [vmem:[%s1526_s1 + $0x28] sm:$0xff] }
  0x17   : > { %278 = vmatpush.msra.mxu0 %v869_v2  ;;  %391 = vmatpush.msra.mxu1 %v1207_v7  ;;  %v866_v12 = vld [vmem:[%s1526_s1 + $0x68] sm:$0xff]  ;;  %v1240_v13 = vld [vmem:[%s1526_s1 + $0xb0] sm:$0xff]  ;;  %v189_v14 = vld [vmem:[%s1526_s1 + $0x20] sm:$0xff]  ;;  %s1282_s11 = scalar_lea.vmem %s1525_s0, %s993_s20  ;;  %s1057_s20 = scalar_lea.hbm %s1528_s3, 256 }
  0x18   : > { %968 = vmatpush.msra.mxu3 %v868_v5  ;;  %532 = vmatpush.msra.mxu2 %v1202_v6  ;;  %v865_v15 = vld [vmem:[%s1526_s1 + $0x60] sm:$0xff]  ;;  %v1252_v16 = vld [vmem:[%s1526_s1 + $0xa8] sm:$0xff]  ;;  %v188_v17 = vld [vmem:[%s1526_s1 + $0x18] sm:$0xff] }
  0x19   : > { %279 = vmatpush.msra.mxu0 %v868_v5  ;;  %392 = vmatpush.msra.mxu1 %v1213_v8  ;;  %v864_v18 = vld [vmem:[%s1526_s1 + $0x58] sm:$0xff]  ;;  %v1265_v19 = vld [vmem:[%s1526_s1 + $0xa0] sm:$0xff]  ;;  %v187_v20 = vld [vmem:[%s1526_s1 + $0x10] sm:$0xff] }
  0x1a   : > { %969 = vmatpush.msra.mxu3 %v867_v9  ;;  %533 = vmatpush.msra.mxu2 %v1222_v10  ;;  %v863_v21 = vld [vmem:[%s1526_s1 + $0x50] sm:$0xff]  ;;  %v1277_v22 = vld [vmem:[%s1526_s1 + $0x98] sm:$0xff]  ;;  %v186_v23 = vld [vmem:[%s1526_s1 + $0x8] sm:$0xff] }
  0x1b   : > { %280 = vmatpush.msra.mxu0 %v867_v9  ;;  %393 = vmatpush.msra.mxu1 %v190_v11  ;;  %v862_v24 = vld [vmem:[%s1526_s1 + $0x48] sm:$0xff]  ;;  %v1294_v25 = vld [vmem:[%s1526_s1 + $0x90] sm:$0xff]  ;;  %v858_v26 = vld [vmem:[%s1282_s11 + $0xe0] sm:$0xff] }
  0x1c   : > { %970 = vmatpush.msra.mxu3 %v866_v12  ;;  %534 = vmatpush.msra.mxu2 %v1240_v13  ;;  %v903_v27 = vld [vmem:[%s1282_s11 + $0x100] sm:$0xff]  ;;  %v859_v31 = vld [vmem:[%s1282_s11 + $0xe8] sm:$0xff]  ;;  %v860_v35 = vld [vmem:[%s1282_s11 + $0xf0] sm:$0xff] }
  0x1d   : > { %281 = vmatpush.msra.mxu0 %v866_v12  ;;  %394 = vmatpush.msra.mxu1 %v189_v14  ;;  %v185_v28 = vld [vmem:[%s1526_s1] sm:$0xff]  ;;  %v904_v32 = vld [vmem:[%s1282_s11 + $0x108] sm:$0xff]  ;;  %v905_v36 = vld [vmem:[%s1282_s11 + $0x110] sm:$0xff] }
  0x1e   : > { %971 = vmatpush.msra.mxu3 %v865_v15  ;;  %535 = vmatpush.msra.mxu2 %v1252_v16  ;;  %v846_v29 = vld [vmem:[%s1282_s11 + $0x80] sm:$0xff]  ;;  %v847_v33 = vld [vmem:[%s1282_s11 + $0x88] sm:$0xff]  ;;  %v848_v37 = vld [vmem:[%s1282_s11 + $0x90] sm:$0xff] }
  0x1f   : > { %282 = vmatpush.msra.mxu0 %v865_v15  ;;  %395 = vmatpush.msra.mxu1 %v188_v17  ;;  %v169_v30 = vld [vmem:[%s1282_s11] sm:$0xff]  ;;  %v170_v34 = vld [vmem:[%s1282_s11 + $0x8] sm:$0xff]  ;;  %v171_v38 = vld [vmem:[%s1282_s11 + $0x10] sm:$0xff] }
  0x20   : > { %972 = vmatpush.msra.mxu3 %v864_v18  ;;  %536 = vmatpush.msra.mxu2 %v1265_v19  ;;  %v861_v39 = vld [vmem:[%s1282_s11 + $0xf8] sm:$0xff]  ;;  %v181_v43 = vld [vmem:[%s1282_s11 + $0x60] sm:$0xff]  ;;  %v182_v47 = vld [vmem:[%s1282_s11 + $0x68] sm:$0xff] }
  0x21   : > { %283 = vmatpush.msra.mxu0 %v864_v18  ;;  %396 = vmatpush.msra.mxu1 %v187_v20  ;;  %v906_v40 = vld [vmem:[%s1282_s11 + $0x118] sm:$0xff]  ;;  %v907_v44 = vld [vmem:[%s1282_s11 + $0x120] sm:$0xff]  ;;  %v908_v48 = vld [vmem:[%s1282_s11 + $0x128] sm:$0xff] }
  0x22   : > { %973 = vmatpush.msra.mxu3 %v863_v21  ;;  %537 = vmatpush.msra.mxu2 %v1277_v22  ;;  %v849_v41 = vld [vmem:[%s1282_s11 + $0x98] sm:$0xff]  ;;  %v850_v45 = vld [vmem:[%s1282_s11 + $0xa0] sm:$0xff]  ;;  %v851_v49 = vld [vmem:[%s1282_s11 + $0xa8] sm:$0xff] }
  0x23   : > { %284 = vmatpush.msra.mxu0 %v863_v21  ;;  %397 = vmatpush.msra.mxu1 %v186_v23  ;;  %v172_v42 = vld [vmem:[%s1282_s11 + $0x18] sm:$0xff]  ;;  %v173_v46 = vld [vmem:[%s1282_s11 + $0x20] sm:$0xff]  ;;  %v174_v50 = vld [vmem:[%s1282_s11 + $0x28] sm:$0xff] }
  0x24   : > { %974 = vmatpush.msra.mxu3 %v862_v24  ;;  %538 = vmatpush.msra.mxu2 %v1294_v25  ;;  %v183_v51 = vld [vmem:[%s1282_s11 + $0x70] sm:$0xff]  ;;  %v184_v55 = vld [vmem:[%s1282_s11 + $0x78] sm:$0xff]  ;;  %v911_v59 = vld [vmem:[%s1282_s11 + $0x140] sm:$0xff] }
  0x25   : > { %883 = vmatmul.msk.f32.vlgmr.msra.gmra.mxu3 %vm221_vm0, %v858_v26  ;;  %928 = vmatmul.msk.f32.vlgmr.msra.gmra.mxu2 %vm221_vm0, %v903_v27  ;;  %v909_v52 = vld [vmem:[%s1282_s11 + $0x130] sm:$0xff]  ;;  %v910_v56 = vld [vmem:[%s1282_s11 + $0x138] sm:$0xff]  ;;  %v915_v60 = vld [vmem:[%s1282_s11 + $0x160] sm:$0xff] }
  0x26   : > { %285 = vmatpush.msra.mxu0 %v862_v24  ;;  %398 = vmatpush.msra.mxu1 %v185_v28  ;;  %v852_v53 = vld [vmem:[%s1282_s11 + $0xb0] sm:$0xff]  ;;  %v853_v57 = vld [vmem:[%s1282_s11 + $0xb8] sm:$0xff]  ;;  %v854_v61 = vld [vmem:[%s1282_s11 + $0xc0] sm:$0xff] }
  0x27   : > { %871 = vmatmul.msk.f32.vlgmr.msra.gmra.mxu0 %vm221_vm0, %v846_v29  ;;  %887 = vmatmul.msk.f32.vlgmr.msra.gmra.mxu1 %vm221_vm0, %v169_v30  ;;  %v175_v54 = vld [vmem:[%s1282_s11 + $0x30] sm:$0xff]  ;;  %v176_v58 = vld [vmem:[%s1282_s11 + $0x38] sm:$0xff]  ;;  %v177_v62 = vld [vmem:[%s1282_s11 + $0x40] sm:$0xff] }
  0x28   : > { %975 = vmatpush.msrb.mxu3 %v1193_v4  ;;  %v912_v63 = vld [vmem:[%s1282_s11 + $0x148] sm:$0xff]  ;;  %v917_v4 = vld [vmem:[%s1282_s11 + $0x170] sm:$0xff]  ;;  %v857_v9 = vld [vmem:[%s1282_s11 + $0xd8] sm:$0xff] }
  0x29   : > { %v916_v0 = vld [vmem:[%s1282_s11 + $0x168] sm:$0xff]  ;;  %v856_v5 = vld [vmem:[%s1282_s11 + $0xd0] sm:$0xff] }
  0x2a   : > { %976 = vmatpush.msrb.mxu3 %v1207_v7  ;;  %v178_v2 = vld [vmem:[%s1282_s11 + $0x48] sm:$0xff]  ;;  %v914_v7 = vld [vmem:[%s1282_s11 + $0x158] sm:$0xff] }
  0x2c   : > { %977 = vmatpush.msrb.mxu3 %v1213_v8  ;;  %v918_v8 = vld [vmem:[%s1282_s11 + $0x178] sm:$0xff] }
  0x2d   : > { %884 = vmatmul.msk.f32.gmra.mxu3 %vm221_vm0, %v859_v31  ;;  %929 = vmatmul.msk.f32.gmra.mxu2 %vm221_vm0, %v904_v32 }
  0x2e   : > { %978 = vmatpush.msrb.mxu3 %v190_v11 }
  0x2f   : > { %872 = vmatmul.msk.f32.gmra.mxu0 %vm221_vm0, %v847_v33  ;;  %888 = vmatmul.msk.f32.gmra.mxu1 %vm221_vm0, %v170_v34 }
  0x30   : > { %979 = vmatpush.msrb.mxu3 %v189_v14  ;;  %v1412_v14 = vld [vmem:[%s1527_s2] ss:$0 sm:$0xff] }
  0x32   : > { %980 = vmatpush.msrb.mxu3 %v188_v17 }
  0x34   : > { %981 = vmatpush.msrb.mxu3 %v187_v20 }
  0x35   : > { %885 = vmatmul.msk.f32.gmra.mxu3 %vm221_vm0, %v860_v35  ;;  %930 = vmatmul.msk.f32.gmra.mxu2 %vm221_vm0, %v905_v36 }
  0x36   : > { %982 = vmatpush.msrb.mxu3 %v186_v23  ;;  %v1101_v23 = vmov 0.0  }
  0x37   : > { %873 = vmatmul.msk.f32.gmra.mxu0 %vm221_vm0, %v848_v37  ;;  %889 = vmatmul.msk.f32.gmra.mxu1 %vm221_vm0, %v171_v38 }
  0x38   : > { %983 = vmatpush.msrb.mxu3 %v185_v28 }
  0x3a   : > { %984 = vmatpush.msra.mxu3 %v1178_v1  ;;  %v855_v1 = vld [vmem:[%s1282_s11 + $0xc8] sm:$0xff] }
  0x3c   : > { %985 = vmatpush.msra.mxu3 %v1188_v3  ;;  %v913_v3 = vld [vmem:[%s1282_s11 + $0x150] sm:$0xff] }
  0x3d   : > { %886 = vmatmul.msk.f32.gmra.mxu3 %vm221_vm0, %v861_v39  ;;  %931 = vmatmul.msk.f32.gmra.mxu2 %vm221_vm0, %v906_v40 }
  0x3e   : > { %986 = vmatpush.msra.mxu3 %v1202_v6  ;;  %v179_v6 = vld [vmem:[%s1282_s11 + $0x50] sm:$0xff] }
  0x3f   : > { %874 = vmatmul.msk.f32.gmra.mxu0 %vm221_vm0, %v849_v41  ;;  %890 = vmatmul.msk.f32.gmra.mxu1 %vm221_vm0, %v172_v42 }
  0x40   : > { %987 = vmatpush.msra.mxu3 %v1222_v10  ;;  %v180_v10 = vld [vmem:[%s1282_s11 + $0x58] sm:$0xff]  ;;  %s777_s11 = sshll.u32 %s774_s10, 4  ;;  %s778_s11 = int_to_ptr.hbm [resolvable:$true] %s777_s11 }
  0x41   : > { %s1051_s19 = sshra.s32 %s778_s11, 4  ;;  %s1052_s19 = int_to_ptr.hbm [resolvable:$true] %s1051_s19 }
  0x42   : > { %988 = vmatpush.msra.mxu3 %v1240_v13  ;;  %s1053_s24 = scalar_lea.hbm %s1052_s19, 128  ;;  %p1058_p0 = scmp.lt.s32.totalorder %s1052_s19, %s1528_s3 }
  0x43   : > { %p1054_p11 = scmp.ne.s32.totalorder %s1052_s19, %s1053_s24  ;;  %p1059_p1 = scmp.lt.s32.totalorder %s1057_s20, %s1053_s24 }
  0x44   : > { %989 = vmatpush.msra.mxu3 %v1252_v16 }
  0x45   : > { %899 = vmatmul.msk.f32.vlgmr.msrb.gmra.mxu3 %vm221_vm0, %v181_v43  ;;  %932 = vmatmul.msk.f32.gmra.mxu2 %vm221_vm0, %v907_v44  ;;  %p1055_p12 = pnand %p1054_p11, %p1162_p5  ;;  %p1060_p2 = por %p1059_p1, %p1058_p0 }
  0x46   : > { %990 = vmatpush.msra.mxu3 %v1265_v19 }
  0x47   : > { %875 = vmatmul.msk.f32.gmra.mxu0 %vm221_vm0, %v850_v45  ;;  %891 = vmatmul.msk.f32.gmra.mxu1 %vm221_vm0, %v173_v46  ;;  %p1056_p13 = pneg %p1055_p12 }
  0x48   : > { %991 = vmatpush.msra.mxu3 %v1277_v22 }
  0x49   : > { %p1061_p3 = pnand %p1060_p2, %p1056_p13 }
  0x4a   : > { %992 = vmatpush.msra.mxu3 %v1294_v25 }
  0x4d   : > { %900 = vmatmul.msk.f32.gmra.mxu3 %vm221_vm0, %v182_v47  ;;  %933 = vmatmul.msk.f32.gmra.mxu2 %vm221_vm0, %v908_v48 }
  0x4f   : > { %876 = vmatmul.msk.f32.gmra.mxu0 %vm221_vm0, %v851_v49  ;;  %892 = vmatmul.msk.f32.gmra.mxu1 %vm221_vm0, %v174_v50 }
  0x55   : > { %901 = vmatmul.msk.f32.gmra.mxu3 %vm221_vm0, %v183_v51  ;;  %934 = vmatmul.msk.f32.gmra.mxu2 %vm221_vm0, %v909_v52 }
  0x57   : > { %877 = vmatmul.msk.f32.gmra.mxu0 %vm221_vm0, %v852_v53  ;;  %893 = vmatmul.msk.f32.gmra.mxu1 %vm221_vm0, %v175_v54 }
  0x5d   : > { %902 = vmatmul.msk.f32.gmra.mxu3 %vm221_vm0, %v184_v55  ;;  %935 = vmatmul.msk.f32.gmra.mxu2 %vm221_vm0, %v910_v56 }
  0x5f   : > { %878 = vmatmul.msk.f32.gmra.mxu0 %vm221_vm0, %v853_v57  ;;  %894 = vmatmul.msk.f32.gmra.mxu1 %vm221_vm0, %v176_v58 }
  0x65   : > { %936 = vmatmul.msk.f32.gmra.mxu2 %vm221_vm0, %v911_v59  ;;  %940 = vmatmul.msk.f32.vlgmr.msra.gmra.mxu3 %vm221_vm0, %v915_v60 }
  0x67   : > { %879 = vmatmul.msk.f32.gmra.mxu0 %vm221_vm0, %v854_v61  ;;  %895 = vmatmul.msk.f32.gmra.mxu1 %vm221_vm0, %v177_v62 }
  0x6d   : > { %937 = vmatmul.msk.f32.gmra.mxu2 %vm221_vm0, %v912_v63  ;;  %941 = vmatmul.msk.f32.gmra.mxu3 %vm221_vm0, %v916_v0 }
  0x6f   : > { %880 = vmatmul.msk.f32.gmra.mxu0 %vm221_vm0, %v855_v1  ;;  %896 = vmatmul.msk.f32.gmra.mxu1 %vm221_vm0, %v178_v2 }
  0x75   : > { %938 = vmatmul.msk.f32.gmra.mxu2 %vm221_vm0, %v913_v3  ;;  %942 = vmatmul.msk.f32.gmra.mxu3 %vm221_vm0, %v917_v4 }
  0x77   : > { %881 = vmatmul.msk.f32.gmra.mxu0 %vm221_vm0, %v856_v5  ;;  %897 = vmatmul.msk.f32.gmra.mxu1 %vm221_vm0, %v179_v6 }
  0x7d   : > { %939 = vmatmul.msk.f32.gmra.mxu2 %vm221_vm0, %v914_v7  ;;  %943 = vmatmul.msk.f32.gmra.mxu3 %vm221_vm0, %v918_v8 }
  0x7f   : > { %882 = vmatmul.msk.f32.gmra.mxu0 %vm221_vm0, %v857_v9  ;;  %898 = vmatmul.msk.f32.gmra.mxu1 %vm221_vm0, %v180_v10 }
  0xa4   : > { %v287_v11 = vpop.f32.mrf.mxu0  ;;  %v400_v12 = vpop.f32.mrf.mxu1 }
  0xa5   : > { %v401_v13 = vadd.f32 %v400_v12, %v287_v11 }
  0xa8   : > { %v1414_v15 = vpop.f32.mrf.mxu3  ;;  %v540_v16 = vpop.f32.mrf.mxu2 }
  0xa9   : > { %v588_v17 = vadd.f32 %v540_v16, %v401_v13 }
  0xab   : > { %v608_v18 = vadd.f32 %v1412_v14, %v588_v17 }
  0xac   : > { %v290_v19 = vpop.f32.mrf.mxu0  ;;  %v403_v20 = vpop.f32.mrf.mxu1 }
  0xad   : > { %v624_v21 = vmul.f32 0.25, %v608_v18  ;;  %v404_v22 = vadd.f32 %v403_v20, %v290_v19 }
  0xaf   : > { %vm628_vm1 = vcmp.gt.f32.partialorder %v624_v21, 0.5 }
  0xb0   : > { %v944_v24 = vsel %vm628_vm1, 1.0, %v1101_v23  ;;  %v1421_v25 = vpop.f32.mrf.mxu3  ;;  %v543_v26 = vpop.f32.mrf.mxu2 }
  0xb1   : > { %746 = vst [vmem:[%s1423_s6] sm:$0xff] %v944_v24  ;;  %v589_v27 = vadd.f32 %v543_v26, %v404_v22  ;;  %v634_v31 = vmul.f32 0.5, %v944_v24 }
  0xb3   : > { %v609_v28 = vadd.f32 %v1412_v14, %v589_v27  ;;  %v636_v37 = vsub.f32 %v624_v21, %v634_v31 }
  0xb4   : > { %v293_v29 = vpop.f32.mrf.mxu0  ;;  %v406_v30 = vpop.f32.mrf.mxu1 }
  0xb5   : > { %v625_v32 = vmul.f32 0.25, %v609_v28  ;;  %v407_v33 = vadd.f32 %v406_v30, %v293_v29  ;;  %v638_v42 = vmul.f32 0.875, %v636_v37 }
  0xb7   : > { %vm629_vm2 = vcmp.gt.f32.partialorder %v625_v32, 0.5 }
  0xb8   : > { %v945_v34 = vsel %vm629_vm2, 1.0, %v1101_v23  ;;  %v1428_v35 = vpop.f32.mrf.mxu3  ;;  %v546_v36 = vpop.f32.mrf.mxu2 }
  0xb9   : > { %747 = vst [vmem:[%s1423_s6 + $0x8] sm:$0xff] %v945_v34  ;;  %v590_v38 = vadd.f32 %v546_v36, %v407_v33  ;;  %v635_v43 = vmul.f32 0.5, %v945_v34 }
  0xbb   : > { %v610_v39 = vadd.f32 %v1412_v14, %v590_v38  ;;  %v637_v49 = vsub.f32 %v625_v32, %v635_v43 }
  0xbc   : > { %v296_v40 = vpop.f32.mrf.mxu0  ;;  %v409_v41 = vpop.f32.mrf.mxu1 }
  0xbd   : > { %v640_v44 = vmul.f32 0.25, %v610_v39  ;;  %v410_v45 = vadd.f32 %v409_v41, %v296_v40  ;;  %v639_v55 = vmul.f32 0.875, %v637_v49 }
  0xbf   : > { %v642_v46 = vadd.f32 %v640_v44, %v638_v42 }
  0xc0   : > { %v1432_v47 = vpop.f32.mrf.mxu3  ;;  %v549_v48 = vpop.f32.mrf.mxu2 }
  0xc1   : > { %vm644_vm3 = vcmp.gt.f32.partialorder %v642_v46, 0.5  ;;  %v591_v50 = vadd.f32 %v549_v48, %v410_v45 }
  0xc2   : > { %v946_v51 = vsel %vm644_vm3, 1.0, %v1101_v23 }
  0xc3   : > { %748 = vst [vmem:[%s1423_s6 + $0x10] sm:$0xff] %v946_v51  ;;  %v611_v52 = vadd.f32 %v1412_v14, %v591_v50  ;;  %v650_v56 = vmul.f32 0.5, %v946_v51 }
  0xc4   : > { %v299_v53 = vpop.f32.mrf.mxu0  ;;  %v412_v54 = vpop.f32.mrf.mxu1 }
  0xc5   : > { %v641_v57 = vmul.f32 0.25, %v611_v52  ;;  %v413_v58 = vadd.f32 %v412_v54, %v299_v53  ;;  %v652_v62 = vsub.f32 %v642_v46, %v650_v56 }
  0xc7   : > { %v643_v59 = vadd.f32 %v641_v57, %v639_v55  ;;  %v654_v5 = vmul.f32 0.875, %v652_v62 }
  0xc8   : > { %v1437_v60 = vpop.f32.mrf.mxu3  ;;  %v552_v61 = vpop.f32.mrf.mxu2 }
  0xc9   : > { %vm645_vm4 = vcmp.gt.f32.partialorder %v643_v59, 0.5  ;;  %v592_v63 = vadd.f32 %v552_v61, %v413_v58 }
  0xca   : > { %v947_v0 = vsel %vm645_vm4, 1.0, %v1101_v23 }
  0xcb   : > { %749 = vst [vmem:[%s1423_s6 + $0x18] sm:$0xff] %v947_v0  ;;  %v612_v1 = vadd.f32 %v1412_v14, %v592_v63  ;;  %v651_v4 = vmul.f32 0.5, %v947_v0 }
  0xcc   : > { %v302_v2 = vpop.f32.mrf.mxu0  ;;  %v415_v3 = vpop.f32.mrf.mxu1 }
  0xcd   : > { %v656_v6 = vmul.f32 0.25, %v612_v1  ;;  %v416_v7 = vadd.f32 %v415_v3, %v302_v2  ;;  %v653_v10 = vsub.f32 %v643_v59, %v651_v4 }
  0xcf   : > { %v658_v8 = vadd.f32 %v656_v6, %v654_v5  ;;  %v655_v20 = vmul.f32 0.875, %v653_v10 }
  0xd0   : > { %v555_v9 = vpop.f32.mrf.mxu2  ;;  %v1442_v11 = vpop.f32.mrf.mxu3 }
  0xd1   : > { %vm660_vm5 = vcmp.gt.f32.partialorder %v658_v8, 0.5  ;;  %v593_v12 = vadd.f32 %v555_v9, %v416_v7 }
  0xd2   : > { %v948_v13 = vsel %vm660_vm5, 1.0, %v1101_v23 }
  0xd3   : > { %750 = vst [vmem:[%s1423_s6 + $0x20] sm:$0xff] %v948_v13  ;;  %v613_v16 = vadd.f32 %v1412_v14, %v593_v12  ;;  %v666_v19 = vmul.f32 0.5, %v948_v13 }
  0xd4   : > { %v305_v17 = vpop.f32.mrf.mxu0  ;;  %v418_v18 = vpop.f32.mrf.mxu1 }
  0xd5   : > { %v657_v21 = vmul.f32 0.25, %v613_v16  ;;  %v419_v22 = vadd.f32 %v418_v18, %v305_v17  ;;  %v668_v27 = vsub.f32 %v658_v8, %v666_v19 }
  0xd7   : > { %v659_v24 = vadd.f32 %v657_v21, %v655_v20  ;;  %v670_v36 = vmul.f32 0.875, %v668_v27  ;;  %v437_v27 = vadd.f32 %v1437_v60, %v1414_v15 }
  0xd8   : > { %v558_v26 = vpop.f32.mrf.mxu2  ;;  %v1449_v30 = vpop.f32.mrf.mxu3 }
  0xd9   : > { %vm661_vm6 = vcmp.gt.f32.partialorder %v659_v24, 0.5  ;;  %v594_v28 = vadd.f32 %v558_v26, %v419_v22 }
  0xda   : > { %v949_v29 = vsel %vm661_vm6, 1.0, %v1101_v23 }
  0xdb   : > { %751 = vst [vmem:[%s1423_s6 + $0x28] sm:$0xff] %v949_v29  ;;  %v614_v31 = vadd.f32 %v1412_v14, %v594_v28  ;;  %v667_v34 = vmul.f32 0.5, %v949_v29 }
  0xdc   : > { %v308_v32 = vpop.f32.mrf.mxu0  ;;  %v421_v33 = vpop.f32.mrf.mxu1 }
  0xdd   : > { %v672_v37 = vmul.f32 0.25, %v614_v31  ;;  %v422_v38 = vadd.f32 %v421_v33, %v308_v32  ;;  %v669_v41 = vsub.f32 %v659_v24, %v667_v34 }
  0xdf   : > { %v674_v39 = vadd.f32 %v672_v37, %v670_v36  ;;  %v671_v49 = vmul.f32 0.875, %v669_v41 }
  0xe0   : > { %v561_v40 = vpop.f32.mrf.mxu2  ;;  %v1455_v52 = vpop.f32.mrf.mxu3 }
  0xe1   : > { %vm676_vm7 = vcmp.gt.f32.partialorder %v674_v39, 0.5  ;;  %v595_v42 = vadd.f32 %v561_v40, %v422_v38 }
  0xe2   : > { %v950_v43 = vsel %vm676_vm7, 1.0, %v1101_v23 }
  0xe3   : > { %752 = vst [vmem:[%s1423_s6 + $0x30] sm:$0xff] %v950_v43  ;;  %v615_v44 = vadd.f32 %v1412_v14, %v595_v42  ;;  %v682_v48 = vmul.f32 0.5, %v950_v43 }
  0xe4   : > { %v311_v45 = vpop.f32.mrf.mxu0  ;;  %v424_v46 = vpop.f32.mrf.mxu1 }
  0xe5   : > { %v673_v50 = vmul.f32 0.25, %v615_v44  ;;  %v425_v51 = vadd.f32 %v424_v46, %v311_v45  ;;  %v684_v55 = vsub.f32 %v674_v39, %v682_v48  ;;  %v440_v44 = vadd.f32 %v1442_v11, %v1421_v25 }
  0xe7   : > { %v675_v53 = vadd.f32 %v673_v50, %v671_v49  ;;  %v686_v63 = vmul.f32 0.875, %v684_v55  ;;  %v443_v49 = vadd.f32 %v1449_v30, %v1428_v35 }
  0xe8   : > { %v564_v54 = vpop.f32.mrf.mxu2  ;;  %v576_v3 = vpop.f32.mrf.mxu3 }
  0xe9   : > { %vm677_vm8 = vcmp.gt.f32.partialorder %v675_v53, 0.5  ;;  %v596_v56 = vadd.f32 %v564_v54, %v425_v51  ;;  %v600_v36 = vadd.f32 %v576_v3, %v437_v27 }
  0xea   : > { %v951_v57 = vsel %vm677_vm8, 1.0, %v1101_v23 }
  0xeb   : > { %753 = vst [vmem:[%s1423_s6 + $0x38] sm:$0xff] %v951_v57  ;;  %v616_v58 = vadd.f32 %v1412_v14, %v596_v56  ;;  %v683_v62 = vmul.f32 0.5, %v951_v57  ;;  %v620_v42 = vadd.f32 %v1412_v14, %v600_v36 }
  0xec   : > { %v314_v59 = vpop.f32.mrf.mxu0  ;;  %v427_v61 = vpop.f32.mrf.mxu1 }
  0xed   : > { %v688_v0 = vmul.f32 0.25, %v616_v58  ;;  %v428_v1 = vadd.f32 %v427_v61, %v314_v59  ;;  %v685_v5 = vsub.f32 %v675_v53, %v683_v62  ;;  %v720_v50 = vmul.f32 0.25, %v620_v42 }
  0xee   : > { %v446_v62 = vadd.f32 %v1455_v52, %v1432_v47 }
  0xef   : > { %v690_v2 = vadd.f32 %v688_v0, %v686_v63  ;;  %v687_v13 = vmul.f32 0.875, %v685_v5 }
  0xf0   : > { %v567_v4 = vpop.f32.mrf.mxu2  ;;  %v579_v24 = vpop.f32.mrf.mxu3 }
  0xf1   : > { %vm692_vm9 = vcmp.gt.f32.partialorder %v690_v2, 0.5  ;;  %v597_v6 = vadd.f32 %v567_v4, %v428_v1  ;;  %v601_v51 = vadd.f32 %v579_v24, %v440_v44 }
  0xf2   : > { %v952_v7 = vsel %vm692_vm9, 1.0, %v1101_v23 }
  0xf3   : > { %754 = vst [vmem:[%s1423_s6 + $0x40] sm:$0xff] %v952_v7  ;;  %v617_v8 = vadd.f32 %v1412_v14, %v597_v6  ;;  %v698_v12 = vmul.f32 0.5, %v952_v7  ;;  %v621_v58 = vadd.f32 %v1412_v14, %v601_v51 }
  0xf4   : > { %v317_v9 = vpop.f32.mrf.mxu0  ;;  %v430_v10 = vpop.f32.mrf.mxu1 }
  0xf5   : > { %v689_v16 = vmul.f32 0.25, %v617_v8  ;;  %v431_v17 = vadd.f32 %v430_v10, %v317_v9  ;;  %v700_v20 = vsub.f32 %v690_v2, %v698_v12  ;;  %v721_v63 = vmul.f32 0.25, %v621_v58 }
  0xf7   : > { %v691_v18 = vadd.f32 %v689_v16, %v687_v13  ;;  %v702_v32 = vmul.f32 0.875, %v700_v20 }
  0xf8   : > { %v570_v19 = vpop.f32.mrf.mxu2  ;;  %v582_v60 = vpop.f32.mrf.mxu3 }
  0xf9   : > { %vm693_vm10 = vcmp.gt.f32.partialorder %v691_v18, 0.5  ;;  %v598_v21 = vadd.f32 %v570_v19, %v431_v17  ;;  %v602_v55 = vadd.f32 %v582_v60, %v443_v49 }
  0xfa   : > { %v953_v22 = vsel %vm693_vm10, 1.0, %v1101_v23 }
  0xfb   : > { %755 = vst [vmem:[%s1423_s6 + $0x48] sm:$0xff] %v953_v22  ;;  %v618_v26 = vadd.f32 %v1412_v14, %v598_v21  ;;  %v699_v31 = vmul.f32 0.5, %v953_v22  ;;  %v622_v35 = vadd.f32 %v1412_v14, %v602_v55 }
  0xfc   : > { %v320_v28 = vpop.f32.mrf.mxu0  ;;  %v433_v29 = vpop.f32.mrf.mxu1 }
  0xfd   : > { %v704_v33 = vmul.f32 0.25, %v618_v26  ;;  %v434_v34 = vadd.f32 %v433_v29, %v320_v28  ;;  %v701_v39 = vsub.f32 %v691_v18, %v699_v31  ;;  %v736_v3 = vmul.f32 0.25, %v622_v35 }
  0xff   : > { %v706_v37 = vadd.f32 %v704_v33, %v702_v32  ;;  %v703_v46 = vmul.f32 0.875, %v701_v39 }
 0x100   : > { %v573_v38 = vpop.f32.mrf.mxu2  ;;  %v585_v61 = vpop.f32.mrf.mxu3 }
 0x101   : > { %vm708_vm11 = vcmp.gt.f32.partialorder %v706_v37, 0.5  ;;  %v599_v40 = vadd.f32 %v573_v38, %v434_v34  ;;  %v603_v4 = vadd.f32 %v585_v61, %v446_v62 }
 0x102   : > { %v954_v41 = vsel %vm708_vm11, 1.0, %v1101_v23 }
 0x103   : > { %v714_v43 = vmul.f32 0.5, %v954_v41  ;;  %756 = vst [vmem:[%s1423_s6 + $0x50] sm:$0xff] %v954_v41  ;;  %v619_v15 = vadd.f32 %v1412_v14, %v599_v40  ;;  %v623_v8 = vadd.f32 %v1412_v14, %v603_v4 }
 0x105   : > { %v716_v45 = vsub.f32 %v706_v37, %v714_v43  ;;  %v705_v48 = vmul.f32 0.25, %v619_v15  ;;  %v737_v12 = vmul.f32 0.25, %v623_v8 }
 0x107   : > { %v718_v53 = vmul.f32 0.875, %v716_v45  ;;  %v707_v54 = vadd.f32 %v705_v48, %v703_v46 }
 0x109   : > { %v722_v56 = vadd.f32 %v720_v50, %v718_v53  ;;  %vm709_vm12 = vcmp.gt.f32.partialorder %v707_v54, 0.5 }
 0x10a   : > { %v955_v57 = vsel %vm709_vm12, 1.0, %v1101_v23 }
 0x10b   : > { %vm724_vm13 = vcmp.gt.f32.partialorder %v722_v56, 0.5  ;;  %v715_v25 = vmul.f32 0.5, %v955_v57  ;;  %757 = vst [vmem:[%s1423_s6 + $0x58] sm:$0xff] %v955_v57 }
 0x10c   : > { %v956_v11 = vsel %vm724_vm13, 1.0, %v1101_v23 }
 0x10d   : > { %v730_v30 = vmul.f32 0.5, %v956_v11  ;;  %758 = vst [vmem:[%s1423_s6 + $0x60] sm:$0xff] %v956_v11  ;;  %v717_v59 = vsub.f32 %v707_v54, %v715_v25 }
 0x10f   : > { %v732_v0 = vsub.f32 %v722_v56, %v730_v30  ;;  %v719_v1 = vmul.f32 0.875, %v717_v59 }
 0x111   : > { %v734_v2 = vmul.f32 0.875, %v732_v0  ;;  %v723_v5 = vadd.f32 %v721_v63, %v719_v1 }
 0x113   : > { %v738_v6 = vadd.f32 %v736_v3, %v734_v2  ;;  %vm725_vm14 = vcmp.gt.f32.partialorder %v723_v5, 0.5 }
 0x114   : > { %v957_v7 = vsel %vm725_vm14, 1.0, %v1101_v23 }
 0x115   : > { %vm740_vm15 = vcmp.gt.f32.partialorder %v738_v6, 0.5  ;;  %v731_v9 = vmul.f32 0.5, %v957_v7  ;;  %759 = vst [vmem:[%s1423_s6 + $0x68] sm:$0xff] %v957_v7 }
 0x116   : > { %v958_v47 = vsel %vm740_vm15, 1.0, %v1101_v23 }
 0x117   : > { %760 = vst [vmem:[%s1423_s6 + $0x70] sm:$0xff] %v958_v47  ;;  %v733_v52 = vsub.f32 %v723_v5, %v731_v9 }
 0x119   : > { %v735_v10 = vmul.f32 0.875, %v733_v52 }
 0x11b   : > { %v739_v13 = vadd.f32 %v737_v12, %v735_v10 }
 0x11d   : > { %vm741_vm0 = vcmp.gt.f32.partialorder %v739_v13, 0.5 }
 0x11e   : > { %v959_v14 = vsel %vm741_vm0, 1.0, %v1101_v23 }
 0x11f   : > { %761 = vst [vmem:[%s1423_s6 + $0x78] sm:$0xff] %v959_v14 }
 0x120   : > { %1064 = shalt.err (!%p1061_p3)
}
 0x121   : > { %s1102_s30 = smov 128   ;;  %s1103_s28 = smov 8  }
 0x122   : > { %994 = dma.vmem_to_hbm [thread:$0]  (%p1162_p5), %s776_s16, 2048, %s778_s11, %s763_s17, %s1102_s30, %s1102_s30, %s1103_s28  }
 0x123 PF: > { %p1000_p4 = scmp.ge.s32.totalorder %s1099_s15, 2  ;;  %s792_s4 = sand.u32 1, %s1087_s12  }
 0x124   : > { %s793_s5 = scalar_lea.sflag [#allocation3], %s792_s4 }
 0x125   : > { %p997_p7 = pnand %p1000_p4, %p1166_p6 }
 0x127   : > { %p998_p8 = pneg %p997_p7 }
 0x129   : > { %1082 = dma.done.wait (%p998_p8), %s793_s5, 2048  }
 0x12a   : > { %1084 = vsyncadd (%p998_p8), %s793_s5, 4294965248  ;;  %p13_p9 = scmp.ge.s32.totalorder %s1149_s18, 4   ;;  %s1531_s12 = smov %s1091_s13 }
 0x12b   : > { %s1532_s13 = smov %s1095_s14  ;;  %s1533_s14 = smov %s1160_s21 }
 0x12c   : > { %s1534_s15 = smov %s1149_s18  ;;  %15 = sbr.rel (!%p13_p9) target bundleno = 3 (0x3), region = 71 }
 0x131   :  { %799 = vsyncpa [#allocation3], 1 }
 0x132   :  { %801 = vsyncpa [#allocation3 + $0x1], 1 }

</bundles_post_ra>
